<compile_context>
chip_gen: v7x
topology: tpu7x:2x2x1
jax: 0.10.0
libtpu: 0.0.40
codegen_flags: <defaults>
</compile_context>

<pallas_src>
import jax
import jax.numpy as jnp
from jax.experimental import pallas as pl
from jax.experimental.pallas import tpu as pltpu


def _round_up(x, m):
    return ((x + m - 1) // m) * m


# ----------------------------------------------------------------------------
# Fused kernel: x row-tile -> L x (bf16 matmul + f32 bias [+ ReLU]) -> out tile
# ----------------------------------------------------------------------------
def _make_fused_mlp_kernel(num_layers):
    def kernel(*refs):
        x_ref = refs[0]
        o_ref = refs[-1]
        param_refs = refs[1:-1]  # interleaved (wT bf16, bias f32) per layer
        h = x_ref[...].astype(jnp.bfloat16)
        for li in range(num_layers):
            wT = param_refs[2 * li][...]          # resident bf16 weight
            b = param_refs[2 * li + 1][...]       # resident f32 bias (1, dout)
            y = jnp.dot(h, wT, preferred_element_type=jnp.float32) + b
            if li < num_layers - 1:
                h = jnp.maximum(y, 0.0).astype(jnp.bfloat16)
            else:
                h = y
        o_ref[...] = h.astype(o_ref.dtype)
    return kernel


# ----------------------------------------------------------------------------
# Parameter init mirroring nn.Linear / nn.BatchNorm1d (eval mode).
# Random BN running stats so the folding path is actually exercised.
# ----------------------------------------------------------------------------
def init_mlp_params(key, in_channels, hidden_channels, out_channels, num_layers):
    dims = [in_channels] + [hidden_channels] * (num_layers - 1) + [out_channels]
    eps = 1e-5
    keys = jax.random.split(key, num_layers)
    raw = []
    for li in range(num_layers):
        din, dout = dims[li], dims[li + 1]
        kw, kb, k1, k2, k3, k4 = jax.random.split(keys[li], 6)
        bound = 1.0 / (din ** 0.5)
        w = jax.random.uniform(kw, (dout, din), jnp.float32, -bound, bound)  # torch (out,in)
        b = jax.random.uniform(kb, (dout,), jnp.float32, -bound, bound)
        layer = {"wT": w.T, "b": b}
        if li < num_layers - 1:
            gamma = jax.random.uniform(k1, (dout,), jnp.float32, 0.5, 1.5)
            beta = 0.1 * jax.random.normal(k2, (dout,), jnp.float32)
            r_mean = 0.1 * jax.random.normal(k3, (dout,), jnp.float32)
            r_var = jax.random.uniform(k4, (dout,), jnp.float32, 0.5, 1.5)
            scale = gamma / jnp.sqrt(r_var + eps)
            shift = beta - r_mean * scale
            layer.update(scale=scale, shift=shift)
        raw.append(layer)
    return raw


def fold_bn_into_next_layer(raw_params):
    """Fold eval-mode BN affine of layer L into layer L+1's weights/bias.

    Valid because ReLU sits between the matmul and the BN affine:
      (relu(z)*s + t) @ W^T + b == relu(z) @ (s[:,None]*W^T) + (b + t @ W^T)
    """
    folded = []
    prev_scale, prev_shift = None, None
    for p in raw_params:
        wT, b = p["wT"], p["b"]
        if prev_scale is not None:
            b = b + prev_shift @ wT
            wT = prev_scale[:, None] * wT
        folded.append((wT, b))
        prev_scale, prev_shift = p.get("scale"), p.get("shift")
    return folded


def prepare_kernel_params(folded_layers):
    """One-time offline prep: pad hidden dims to 128 lanes, cast weights to bf16.

    The first layer's input dim and the last layer's output dim stay unpadded:
    they match the x / output arrays exactly (full-dim lane exemption), so no
    activation padding or post-kernel slicing is ever needed.
    """
    num_layers = len(folded_layers)
    dims = [folded_layers[0][0].shape[0]] + [wT.shape[1] for wT, _ in folded_layers]
    pdims = list(dims)
    for i in range(1, num_layers):  # hidden dims only
        pdims[i] = _round_up(dims[i], 128)
    flat = []
    for li, (wT, b) in enumerate(folded_layers):
        din, dout = wT.shape
        wTp = jnp.pad(wT, ((0, pdims[li] - din), (0, pdims[li + 1] - dout)))
        bp = jnp.pad(b, (0, pdims[li + 1] - dout)).reshape(1, pdims[li + 1])
        flat += [wTp.astype(jnp.bfloat16), bp.astype(jnp.float32)]
    return tuple(flat)


# ----------------------------------------------------------------------------
# Wrapper: single fused pallas_call, row-tiled grid, resident VMEM params
# ----------------------------------------------------------------------------
@jax.jit
def mlp_forward(x, kernel_params):
    N, Din = x.shape
    num_layers = len(kernel_params) // 2
    out_channels = kernel_params[2 * (num_layers - 1)].shape[1]

    # Row tile: >=2 grid steps whenever N > 8 (v7x megacore + DMA/compute
    # overlap), sublane-aligned, capped at 1024 rows (x/out tiles stay well
    # under 1 MiB at these feature widths).
    if N <= 8:
        tm = N  # single full-dim tile
    else:
        tm = max(8, min(1024, _round_up(pl.cdiv(N, 2), 8)))
    grid = (pl.cdiv(N, tm),)

    in_specs = [pl.BlockSpec((tm, Din), lambda i: (i, 0))]
    for _ in range(num_layers):
        # Whole-array, single-buffered VMEM residents (constant across grid).
        in_specs.append(pl.BlockSpec(memory_space=pltpu.MemorySpace.VMEM))  # weight
        in_specs.append(pl.BlockSpec(memory_space=pltpu.MemorySpace.VMEM))  # bias
    out_spec = pl.BlockSpec((tm, out_channels), lambda i: (i, 0))

    # Explicit VMEM budget: resident params (single copy) + double-buffered
    # x / out tiles + slack for live intermediate activations.
    param_bytes = sum(int(p.size) * p.dtype.itemsize for p in kernel_params)
    max_width = max(int(p.shape[-1]) for p in kernel_params)
    io_bytes = 2 * tm * Din * x.dtype.itemsize + 2 * tm * out_channels * 4
    interm_bytes = 4 * tm * max_width * 4
    vmem_limit = int(min(96 << 20,
                         max(32 << 20,
                             param_bytes + io_bytes + interm_bytes + (2 << 20))))

    return pl.pallas_call(
        _make_fused_mlp_kernel(num_layers),
        out_shape=jax.ShapeDtypeStruct((N, out_channels), x.dtype),
        grid_spec=pl.GridSpec(grid=grid, in_specs=in_specs, out_specs=out_spec),
        compiler_params=pltpu.CompilerParams(
            dimension_semantics=("parallel",),
            vmem_limit_bytes=vmem_limit,
        ),
    )(x, *kernel_params)


# Pure-JAX f32 reference on the un-folded params (ground-truth semantics).
def mlp_reference(x, raw_params):
    h = x
    L = len(raw_params)
    for li, p in enumerate(raw_params):
        h = h @ p["wT"] + p["b"]
        if li < L - 1:
            h = jnp.maximum(h, 0.0)
            h = h * p["scale"] + p["shift"]
            # TODO(synk): training-mode dropout / batch-stat BN not implemented
            # (inference path only; dropout is identity in eval mode).
    return h


if __name__ == "__main__":
    key = jax.random.PRNGKey(0)
    kx, kp = jax.random.split(key)

    N, in_channels, hidden_channels, out_channels, num_layers = 16, 32, 64, 8, 3
    x = jax.random.normal(kx, (N, in_channels), jnp.float32)

    raw_params = init_mlp_params(kp, in_channels, hidden_channels, out_channels, num_layers)
    folded = fold_bn_into_next_layer(raw_params)
    kernel_params = prepare_kernel_params(folded)

    out = mlp_forward(x, kernel_params)
    jax.block_until_ready(out)

    assert out.shape == (N, out_channels) and out.dtype == jnp.float32

    ref = mlp_reference(x, raw_params)
    # bf16 MXU matmuls with f32 accumulation -> ~1e-2-level agreement vs f32 ref.
    max_err = float(jnp.max(jnp.abs(out - ref)))
    assert jnp.allclose(out, ref, rtol=5e-2, atol=5e-2), max_err
    print("KERNEL_OK")
</pallas_src>

<mosaic_0001>
module attributes {stable_mosaic.version = 11 : i64} {
  func.func @kernel(%arg0: i32, %arg1: memref<8x32xf32, #tpu.memory_space<vmem>>, %arg2: memref<32x128xbf16, #tpu.memory_space<vmem>>, %arg3: memref<1x128xf32, #tpu.memory_space<vmem>>, %arg4: memref<128x128xbf16, #tpu.memory_space<vmem>>, %arg5: memref<1x128xf32, #tpu.memory_space<vmem>>, %arg6: memref<128x8xbf16, #tpu.memory_space<vmem>>, %arg7: memref<1x8xf32, #tpu.memory_space<vmem>>, %arg8: memref<8x8xf32, #tpu.memory_space<vmem>>) attributes {dimension_semantics = [#tpu.dimension_semantics<parallel>], iteration_bounds = array<i64: 2>, scalar_prefetch = 0 : i64, scratch_operands = 0 : i64, tpu.core_type = #tpu.core_type<tc>, window_params = [{transform_indices = @transform_0, window_bounds = array<i64: 8, 32>}, {pipeline_mode = #tpu.pipeline_mode<synchronous>, transform_indices = @transform_1, window_bounds = array<i64: 32, 128>}, {pipeline_mode = #tpu.pipeline_mode<synchronous>, transform_indices = @transform_2, window_bounds = array<i64: 1, 128>}, {pipeline_mode = #tpu.pipeline_mode<synchronous>, transform_indices = @transform_3, window_bounds = array<i64: 128, 128>}, {pipeline_mode = #tpu.pipeline_mode<synchronous>, transform_indices = @transform_4, window_bounds = array<i64: 1, 128>}, {pipeline_mode = #tpu.pipeline_mode<synchronous>, transform_indices = @transform_5, window_bounds = array<i64: 128, 8>}, {pipeline_mode = #tpu.pipeline_mode<synchronous>, transform_indices = @transform_6, window_bounds = array<i64: 1, 8>}, {transform_indices = @transform_7, window_bounds = array<i64: 8, 8>}]} {
    %c0 = arith.constant 0 : index
    %c0_0 = arith.constant 0 : index
    %0 = vector.load %arg1[%c0, %c0_0] : memref<8x32xf32, #tpu.memory_space<vmem>>, vector<8x32xf32>
    %1 = arith.truncf %0 : vector<8x32xf32> to vector<8x32xbf16>
    %c0_1 = arith.constant 0 : index
    %c0_2 = arith.constant 0 : index
    %2 = vector.load %arg2[%c0_1, %c0_2] : memref<32x128xbf16, #tpu.memory_space<vmem>>, vector<32x128xbf16>
    %c0_3 = arith.constant 0 : index
    %c0_4 = arith.constant 0 : index
    %3 = vector.load %arg3[%c0_3, %c0_4] : memref<1x128xf32, #tpu.memory_space<vmem>>, vector<1x128xf32>
    %cst = arith.constant dense<0.000000e+00> : vector<8x128xf32>
    %4 = tpu.matmul %1, %2, %cst {dimension_numbers = #tpu.dot_dimension_numbers<[1], [0], [0], [1], [0, 0, 1, 1], [], []>} : vector<8x32xbf16>, vector<32x128xbf16>, vector<8x128xf32> -> vector<8x128xf32>
    %5 = vector.broadcast %3 : vector<1x128xf32> to vector<8x128xf32>
    %6 = arith.addf %4, %5 : vector<8x128xf32>
    %cst_5 = arith.constant 0.000000e+00 : f32
    %7 = vector.broadcast %cst_5 : f32 to vector<8x128xf32>
    %8 = arith.maximumf %6, %7 : vector<8x128xf32>
    %9 = arith.truncf %8 : vector<8x128xf32> to vector<8x128xbf16>
    %c0_6 = arith.constant 0 : index
    %c0_7 = arith.constant 0 : index
    %10 = vector.load %arg4[%c0_6, %c0_7] : memref<128x128xbf16, #tpu.memory_space<vmem>>, vector<128x128xbf16>
    %c0_8 = arith.constant 0 : index
    %c0_9 = arith.constant 0 : index
    %11 = vector.load %arg5[%c0_8, %c0_9] : memref<1x128xf32, #tpu.memory_space<vmem>>, vector<1x128xf32>
    %cst_10 = arith.constant dense<0.000000e+00> : vector<8x128xf32>
    %12 = tpu.matmul %9, %10, %cst_10 {dimension_numbers = #tpu.dot_dimension_numbers<[1], [0], [0], [1], [0, 0, 1, 1], [], []>} : vector<8x128xbf16>, vector<128x128xbf16>, vector<8x128xf32> -> vector<8x128xf32>
    %13 = vector.broadcast %11 : vector<1x128xf32> to vector<8x128xf32>
    %14 = arith.addf %12, %13 : vector<8x128xf32>
    %cst_11 = arith.constant 0.000000e+00 : f32
    %15 = vector.broadcast %cst_11 : f32 to vector<8x128xf32>
    %16 = arith.maximumf %14, %15 : vector<8x128xf32>
    %17 = arith.truncf %16 : vector<8x128xf32> to vector<8x128xbf16>
    %c0_12 = arith.constant 0 : index
    %c0_13 = arith.constant 0 : index
    %18 = vector.load %arg6[%c0_12, %c0_13] : memref<128x8xbf16, #tpu.memory_space<vmem>>, vector<128x8xbf16>
    %c0_14 = arith.constant 0 : index
    %c0_15 = arith.constant 0 : index
    %19 = vector.load %arg7[%c0_14, %c0_15] : memref<1x8xf32, #tpu.memory_space<vmem>>, vector<1x8xf32>
    %cst_16 = arith.constant dense<0.000000e+00> : vector<8x8xf32>
    %20 = tpu.matmul %17, %18, %cst_16 {dimension_numbers = #tpu.dot_dimension_numbers<[1], [0], [0], [1], [0, 0, 1, 1], [], []>} : vector<8x128xbf16>, vector<128x8xbf16>, vector<8x8xf32> -> vector<8x8xf32>
    %21 = vector.broadcast %19 : vector<1x8xf32> to vector<8x8xf32>
    %22 = arith.addf %20, %21 : vector<8x8xf32>
    %c0_17 = arith.constant 0 : index
    %c0_18 = arith.constant 0 : index
    %23 = vector.load %arg8[%c0_17, %c0_18] : memref<8x8xf32, #tpu.memory_space<vmem>>, vector<8x8xf32>
    tpu.vector_store %arg8[%c0_17, %c0_18], %22 {strides = array<i32>} : memref<8x8xf32, #tpu.memory_space<vmem>>, vector<8x8xf32>,
    return
  }
  func.func @transform_0(%arg0: i32) -> (i32, i32) {
    %c0_i32 = arith.constant 0 : i32
    %c0_i32_0 = arith.constant 0 : i32
    return %arg0, %c0_i32 : i32, i32
  }
  func.func @transform_1(%arg0: i32) -> (i32, i32) {
    %c0_i32 = arith.constant 0 : i32
    %c0_i32_0 = arith.constant 0 : i32
    %c0_i32_1 = arith.constant 0 : i32
    return %c0_i32, %c0_i32_0 : i32, i32
  }
  func.func @transform_2(%arg0: i32) -> (i32, i32) {
    %c0_i32 = arith.constant 0 : i32
    %c0_i32_0 = arith.constant 0 : i32
    %c0_i32_1 = arith.constant 0 : i32
    return %c0_i32, %c0_i32_0 : i32, i32
  }
  func.func @transform_3(%arg0: i32) -> (i32, i32) {
    %c0_i32 = arith.constant 0 : i32
    %c0_i32_0 = arith.constant 0 : i32
    %c0_i32_1 = arith.constant 0 : i32
    return %c0_i32, %c0_i32_0 : i32, i32
  }
  func.func @transform_4(%arg0: i32) -> (i32, i32) {
    %c0_i32 = arith.constant 0 : i32
    %c0_i32_0 = arith.constant 0 : i32
    %c0_i32_1 = arith.constant 0 : i32
    return %c0_i32, %c0_i32_0 : i32, i32
  }
  func.func @transform_5(%arg0: i32) -> (i32, i32) {
    %c0_i32 = arith.constant 0 : i32
    %c0_i32_0 = arith.constant 0 : i32
    %c0_i32_1 = arith.constant 0 : i32
    return %c0_i32, %c0_i32_0 : i32, i32
  }
  func.func @transform_6(%arg0: i32) -> (i32, i32) {
    %c0_i32 = arith.constant 0 : i32
    %c0_i32_0 = arith.constant 0 : i32
    %c0_i32_1 = arith.constant 0 : i32
    return %c0_i32, %c0_i32_0 : i32, i32
  }
  func.func @transform_7(%arg0: i32) -> (i32, i32) {
    %c0_i32 = arith.constant 0 : i32
    %c0_i32_0 = arith.constant 0 : i32
    return %arg0, %c0_i32 : i32, i32
  }
}

</mosaic_0001>

<bundles_post_ra>
// kernel: mlp_forward.1
= control target key start
LH: loop header
LB: loop body
LE: loop exit
PB: predicated region body
PF: predicated region fallthrough
CT: control target
= control target key end

     0   :  { %12 = vsyncpa [#allocation3], 0  ;;  %s1221_s0 = inlined_call_operand.hbm [shape: f32[16,32], index: 0, kind: input, shape index: {}]   ;;  %s1222_s1 = inlined_call_operand.hbm [shape: bf16[32,128], index: 1, kind: input, shape index: {}]   ;;  %s1223_s2 = inlined_call_operand.vmem [shape: f32[1,128], index: 2, kind: input, shape index: {}]   ;;  %s1224_s3 = inlined_call_operand.vmem [shape: bf16[128,128], index: 3, kind: input, shape index: {}]   ;;  %s1225_s4 = inlined_call_operand.vmem [shape: f32[1,128], index: 4, kind: input, shape index: {}]   ;;  %s1226_s5 = inlined_call_operand.vmem [shape: bf16[128,8], index: 5, kind: input, shape index: {}]   ;;  %s1227_s6 = inlined_call_operand.vmem [shape: f32[1,8], index: 6, kind: input, shape index: {}]   ;;  %s1228_s7 = inlined_call_operand.vmem [shape: f32[16,8], index: 7, kind: output, shape index: {}]  }
   0x1   :  { %14 = vsyncpa [#allocation3 + $0x1], 0 }
   0x2   :  { %15 = vsyncpa [#allocation5], 0  ;;  %s1001_s24 = smov 0   ;;  %s1003_s25 = smov 0  }
   0x3   :  { %s1005_s26 = smov 0   ;;  %s1007_s27 = smov 0  }
   0x4 LB: > { %s1020_s28 = sadd.s32 4294967295, %s953_s27   ;;  %p41_p0 = scmp.ne.s32.totalorder %s945_s25, %s941_s24  ;;  %s953_s27 = sphi %s1007_s27, %s1243_s27   ;;  %s949_s26 = sphi %s1005_s26, %s1242_s26   ;;  %s945_s25 = sphi %s1003_s25, %s1241_s25   ;;  %s941_s24 = sphi %s1001_s24, %s1240_s24  }
   0x5   : > { %p1229_p1 = scmp.eq.s32.totalorder %s1020_s28, 0  ;;  %p683_p2 = scmp.ge.s32.totalorder %s953_s27, 1 }
   0x6   : > { %p204_p3 = scmp.lt.s32.totalorder %s953_s27, 3  ;;  %s955_s8 = smov [#allocation4]  }
   0x7   : > { %p1028_p4 = por %p1229_p1, %p41_p0  ;;  %s216_s9 = sshll.u32 %s955_s8, 4  ;;  %s217_s9 = int_to_ptr.vmem [resolvable:$true] %s216_s9 }
   0x8   : > { %p1032_p5 = pnand %p683_p2, %p204_p3  ;;  %s1045_s11 = sadd.s32 1, %s953_s27  }
   0x9   : > { %s1232_s29 = scalar_select %p1028_p4, 1, 0 }
   0xa   : > { %s1233_s30 = scalar_select %p1032_p5, 1, 0 }
   0xb   : > { %p791_p6 = pneg %p1032_p5  ;;  %s28_s12 = sadd.s32 1, %s949_s26 }
   0xc   : > { %s25_s13 = ssub.s32 %s953_s27, %s1045_s11  ;;  %s857_s16 = scalar_lea.hbm %s1222_s1, 256 }
   0xd   : > { %p1040_p7 = pnand %p791_p6, %p1229_p1  ;;  %p858_p8 = scmp.ne.s32.totalorder %s1222_s1, %s857_s16 }
   0xe   : > { %p864_p12 = scmp.lt.u32.totalorder %s857_s16, %s1222_s1 }
   0xf   : > { %p859_p9 = pneg %p1040_p7 }
  0x11   : > { %p860_p10 = pnand %p859_p9, %p858_p8 }
  0x13   : > { %p861_p11 = pneg %p860_p10 }
  0x15   : > { %p866_p13 = pnand %p864_p12, %p861_p11 }
  0x17   : > { %869 = shalt.err (!%p866_p13)
}
  0x18   : > { %s870_s21 = scalar_lea.vmem %s217_s9, 256  ;;  %p878_p6 = scmp.lt.s32.totalorder %s217_s9, %s217_s9 }
  0x19   : > { %p871_p0 = scmp.ne.s32.totalorder %s217_s9, %s870_s21  ;;  %p879_p1 = scmp.lt.s32.totalorder %s870_s21, %s870_s21 }
  0x1b   : > { %p873_p2 = pnand %p871_p0, %p859_p9  ;;  %p880_p4 = por %p879_p1, %p878_p6 }
  0x1d   : > { %p874_p3 = pneg %p873_p2 }
  0x1f   : > { %p881_p5 = pnand %p880_p4, %p874_p3 }
  0x21   : > { %884 = shalt.err (!%p881_p5)
}
  0x22   : > { %s956_s22 = smov 64   ;;  %s957_s23 = smov 4  }
  0x23   : > { %794 = dma.hbm_to_vmem [thread:$0]  (!%p1040_p7), %s1222_s1, 256, %s217_s9, [#allocation5], %s956_s22, %s956_s22, %s957_s23  }
  0x24   : > { %p26_p8 = scmp.eq.s32.totalorder %s25_s13, 0  ;;  %p35_p9 = scmp.ne.s32.totalorder %s949_s26, %s945_s25 }
  0x25   : > { %p36_p1 = scmp.eq.s32.totalorder %s953_s27, 0  ;;  %p800_p4 = scmp.lt.s32.totalorder %s953_s27, 2 }
  0x26   : > { %s1071_s14 = scalar_select %p26_p8, %s949_s26, %s28_s12  }
  0x27   : > { %p37_p5 = por %p36_p1, %p35_p9  ;;  %s245_s15 = sand.u32 1, %s949_s26  }
  0x28   : > { %s686_s16 = sshll.u32 %s245_s15, 3  ;;  %s687_s17 = sshll.u32 %s953_s27, 7 }
  0x29   : > { %s1078_s20 = scalar_lea.hbm %s1221_s0, %s687_s17  ;;  %s249_s9 = scalar_lea.vmem [#allocation2], %s686_s16 }
  0x2a   : > { %s256_s10 = sshll.u32 %s249_s9, 4  ;;  %p1082_p7 = pnand %p800_p4, %p37_p5  ;;  %s1080_s10 = int_to_ptr.vmem [resolvable:$true] %s256_s10 }
  0x2b   : > { %s246_s27 = scalar_lea.sflag [#allocation3], %s245_s15  ;;  %s885_s13 = scalar_lea.hbm %s1078_s20, 128 }
  0x2c   : > { %p886_p10 = scmp.ne.s32.totalorder %s1078_s20, %s885_s13  ;;  %p887_p11 = pneg %p1082_p7 }
  0x2d   : > { %s890_s23 = scalar_lea.hbm %s1221_s0, 256  ;;  %p891_p0 = scmp.lt.u32.totalorder %s1078_s20, %s1221_s0 }
  0x2e   : > { %p888_p12 = pnand %p887_p11, %p886_p10  ;;  %p892_p2 = scmp.lt.u32.totalorder %s890_s23, %s885_s13 }
  0x2f   : > { %p894_p6 = scmp.lt.u32.totalorder %s885_s13, %s1078_s20 }
  0x30   : > { %p889_p13 = pneg %p888_p12  ;;  %p893_p3 = por %p892_p2, %p891_p0 }
  0x32   : > { %p895_p8 = por %p894_p6, %p893_p3 }
  0x34   : > { %p896_p9 = pnand %p895_p8, %p889_p13 }
  0x36   : > { %899 = shalt.err (!%p896_p9)
}
  0x37   : > { %s900_s15 = scalar_lea.vmem %s1080_s10, 128  ;;  %s958_s16 = smov [#allocation2]  }
  0x38   : > { %p901_p1 = scmp.ne.s32.totalorder %s1080_s10, %s900_s15  ;;  %s905_s17 = sshll.u32 %s958_s16, 4  ;;  %s906_s17 = int_to_ptr.vmem [resolvable:$false] %s905_s17 }
  0x39   : > { %s907_s18 = scalar_lea.vmem %s906_s17, 256  ;;  %p908_p10 = scmp.lt.s32.totalorder %s1080_s10, %s906_s17 }
  0x3a   : > { %p903_p4 = pnand %p901_p1, %p887_p11  ;;  %p909_p12 = scmp.lt.s32.totalorder %s907_s18, %s900_s15 }
  0x3c   : > { %p904_p5 = pneg %p903_p4  ;;  %p910_p0 = por %p909_p12, %p908_p10 }
  0x3e   : > { %p911_p2 = pnand %p910_p0, %p904_p5 }
  0x40   : > { %914 = shalt.err (!%p911_p2)
}
  0x41   : > { %798 = dma.hbm_to_vmem [thread:$0]  (!%p1082_p7), %s1078_s20, 128, %s1080_s10, %s246_s27  }
  0x42   : > { %p1236_p13 = scmp.ne.s32.totalorder %s1233_s30, 0 }
  0x43   : > { %s267_s19 = sand.u32 (!%p1236_p13), 1, %s945_s25   ;;  %p1237_p11 = scmp.ne.s32.totalorder (!%p1236_p13), %s1232_s29, 0 }
  0x44   : > { %265 = sbr.rel (%p1236_p13) target bundleno = 740 (0x2e4), region = 48  ;;  %s689_s9 = sshll.u32 (!%p1236_p13), %s267_s19, 3 }
  0x45   : > { %s268_s13 = scalar_lea.sflag (!%p1236_p13), [#allocation3], %s267_s19  ;;  %s271_s21 = scalar_lea.vmem (!%p1236_p13), [#allocation2], %s689_s9 }
  0x4b   : > { %932 = dma.done.wait (%p1237_p11), %s268_s13, 128  }
  0x4c   : > { %934 = vsyncadd (%p1237_p11), %s268_s13, 4294967168  ;;  %p1238_p3 = scmp.eq.s32.totalorder %s1020_s28, 0 }
  0x4e   : > { %936 = dma.done.wait (%p1238_p3), [#allocation5], 256   ;;  %p1239_p6 = pmov %p1238_p3 }
  0x4f   : > { %v959_v0 = vmov 0.0   ;;  %vm960_vm0 = vmmov 0   ;;  %v839_v1 = vld [vmem:[#allocation4] sm:$0xff]   ;;  %v840_v2 = vld [vmem:[#allocation4 + $0x8] sm:$0xff]   ;;  %v310_v3 = vld [vmem:[%s271_s21] sm:$0xff]  ;;  %vm335_vm1 = vcmask 261120  }
  0x50   : > { %938 = vsyncadd (%p1239_p6), [#allocation5], 4294967040  ;;  %737 = vmatprep.subr.bf16.mxu0 %v959_v0  ;;  %741 = vmatprep.mubr.msk.bf16.mxu0 %vm960_vm0, %v959_v0  ;;  %v841_v4 = vld [vmem:[%s1224_s3] sm:$0xff]   ;;  %v311_v5 = vpack.c.bf16 %v310_v3, %v310_v3  ;;  %v842_v6 = vld [vmem:[%s1224_s3 + $0x8] sm:$0xff]   ;;  %p305_p7 = scmp.lt.s32.totalorder %s1020_s28, 1  ;;  %vm605_vm2 = vcmask 64512  }
  0x51   : > { %745 = vmatprep.subr.bf16.mxu1 %v959_v0  ;;  %761 = vmatprep.mubr.msk.bf16.mxu1 %vm960_vm0, %v959_v0  ;;  %v843_v7 = vld [vmem:[%s1224_s3 + $0x10] sm:$0xff]   ;;  %v844_v8 = vld [vmem:[%s1224_s3 + $0x18] sm:$0xff]   ;;  %v845_v9 = vld [vmem:[%s1224_s3 + $0x20] sm:$0xff]  }
  0x52   : > { %738 = vmatpush3.bf16.msra.mxu0 %v839_v1  ;;  %746 = vmatpush3.bf16.msra.mxu1 %v841_v4  ;;  %v846_v10 = vld [vmem:[%s1224_s3 + $0x28] sm:$0xff]   ;;  %v847_v11 = vld [vmem:[%s1224_s3 + $0x30] sm:$0xff]   ;;  %v848_v12 = vld [vmem:[%s1224_s3 + $0x38] sm:$0xff]   ;;  %s1245_s28 = smov (!%p305_p7, %s1020_s28), 1 }
  0x53   : > { %739 = vmatprep.subr.bf16.mxu0 %v959_v0  ;;  %747 = vmatprep.subr.bf16.mxu1 %v959_v0  ;;  %v849_v13 = vld [vmem:[%s1226_s5] sm:$0xff]   ;;  %v850_v14 = vld [vmem:[%s1226_s5 + $0x8] sm:$0xff]   ;;  %v851_v15 = vld [vmem:[%s1226_s5 + $0x10] sm:$0xff]   ;;  %s691_s29 = sshll.u32 %s1245_s28, 3 }
  0x54   : > { %v852_v16 = vld [vmem:[%s1226_s5 + $0x18] sm:$0xff]   ;;  %v853_v17 = vld [vmem:[%s1226_s5 + $0x20] sm:$0xff]   ;;  %v854_v18 = vld [vmem:[%s1226_s5 + $0x28] sm:$0xff]   ;;  %s308_s27 = scalar_lea.vmem %s1228_s7, %s691_s29 }
  0x55   : > { %v692_v19 = vld [vmem:[%s1223_s2] ss:$0 sm:$0xff]  ;;  %v855_v27 = vld [vmem:[%s1226_s5 + $0x30] sm:$0xff]   ;;  %v856_v28 = vld [vmem:[%s1226_s5 + $0x38] sm:$0xff]  }
  0x56   : > { %740 = vmatpush3.bf16.msra.mxu0 %v840_v2  ;;  %748 = vmatpush3.bf16.msra.mxu1 %v842_v6  ;;  %v696_v29 = vld [vmem:[%s1225_s4] ss:$0 sm:$0xff] }
  0x57   : > { %765 = vmatprep.subr.bf16.mxu0 %v959_v0  ;;  %749 = vmatprep.subr.bf16.mxu1 %v959_v0  ;;  %v705_v37 = vld [vmem:[%s1227_s6] ss:$0 sm:$0xff] }
  0x59   : > { %742 = vmatmul.mubr.msk.bf16.vlgmr.msra.gmra.mrb[0].mxu0 %vm335_vm1, %v311_v5 }
  0x5a   : > { %781 = vmatprep.mubr.msk.bf16.mxu0 %vm960_vm0, %v959_v0  ;;  %750 = vmatpush3.bf16.msra.mxu1 %v843_v7 }
  0x5b   : > { %751 = vmatprep.subr.bf16.mxu1 %v959_v0  ;;  %766 = vmatpush3.bf16.msra.mxu0 %v849_v13 }
  0x5c   : > { %767 = vmatprep.subr.bf16.mxu0 %v959_v0 }
  0x5e   : > { %752 = vmatpush3.bf16.msra.mxu1 %v844_v8 }
  0x5f   : > { %753 = vmatprep.subr.bf16.mxu1 %v959_v0  ;;  %768 = vmatpush3.bf16.msra.mxu0 %v850_v14 }
  0x60   : > { %769 = vmatprep.subr.bf16.mxu0 %v959_v0 }
  0x62   : > { %754 = vmatpush3.bf16.msra.mxu1 %v845_v9 }
  0x63   : > { %755 = vmatprep.subr.bf16.mxu1 %v959_v0  ;;  %770 = vmatpush3.bf16.msra.mxu0 %v851_v15 }
  0x64   : > { %771 = vmatprep.subr.bf16.mxu0 %v959_v0 }
  0x66   : > { %756 = vmatpush3.bf16.msra.mxu1 %v846_v10 }
  0x67   : > { %757 = vmatprep.subr.bf16.mxu1 %v959_v0  ;;  %772 = vmatpush3.bf16.msra.mxu0 %v852_v16 }
  0x68   : > { %773 = vmatprep.subr.bf16.mxu0 %v959_v0 }
  0x6a   : > { %758 = vmatpush3.bf16.msra.mxu1 %v847_v11 }
  0x6b   : > { %759 = vmatprep.subr.bf16.mxu1 %v959_v0  ;;  %774 = vmatpush3.bf16.msra.mxu0 %v853_v17 }
  0x6c   : > { %775 = vmatprep.subr.bf16.mxu0 %v959_v0 }
  0x6e   : > { %760 = vmatpush3.bf16.msra.mxu1 %v848_v12 }
  0x6f   : > { %776 = vmatpush3.bf16.msra.mxu0 %v854_v18 }
  0x70   : > { %777 = vmatprep.subr.bf16.mxu0 %v959_v0 }
  0x73   : > { %778 = vmatpush3.bf16.msra.mxu0 %v855_v27 }
  0x74   : > { %779 = vmatprep.subr.bf16.mxu0 %v959_v0 }
  0x77   : > { %780 = vmatpush3.bf16.msra.mxu0 %v856_v28 }
 0x12c   : > { %v373_v20 = vpop.f32.mrb[0].mxu0 }
 0x12d   : > { %v374_v21 = vadd.f32 %v692_v19, %v373_v20  ;;  %v743_v22 = vpop.f32.mrb[1].mxu0 }
 0x12e   : > { %v376_v23 = vpop.f32.mrb[2].mxu0 }
 0x12f   : > { %v379_v24 = vmax.f32 %v374_v21, 0.0  ;;  %v744_v25 = vpop.f32.mrb[3].mxu0 }
 0x131   : > { %v380_v26 = vpack.c.bf16 %v379_v24, %v379_v24 }
 0x133   : > { %762 = vmatmul.mubr.bf16.vlgmr.msra.gmra.mrb[0].mxu1 %v380_v26 }
 0x206   : > { %v486_v30 = vpop.f32.mrb[0].mxu1 }
 0x207   : > { %v487_v31 = vadd.f32 %v696_v29, %v486_v30  ;;  %v763_v32 = vpop.f32.mrb[1].mxu1 }
 0x208   : > { %v489_v33 = vpop.f32.mrb[2].mxu1 }
 0x209   : > { %v492_v34 = vmax.f32 %v487_v31, 0.0  ;;  %v764_v35 = vpop.f32.mrb[3].mxu1 }
 0x20b   : > { %v493_v36 = vpack.c.bf16 %v492_v34, %v492_v34 }
 0x20d   : > { %782 = vmatmul.mubr.bf16.vlgmr.msra.gmra.mrb[4].mxu0 %v493_v36 }
 0x2e0   : > { %v599_v38 = vpop.f32.mrb[4].mxu0 }
 0x2e1   : > { %v600_v39 = vadd.f32 %v705_v37, %v599_v38  ;;  %v783_v40 = vpop.f32.mrb[5].mxu0 }
 0x2e2   : > { %v602_v41 = vpop.f32.mrb[6].mxu0 }
 0x2e3   : > { %606 = vst.msk [vmem:[%s308_s27] sm:$0xff] %vm605_vm2, %v600_v39  ;;  %v784_v42 = vpop.f32.mrb[7].mxu0 }
 0x2e4 PF: > { %p18_p8 = scmp.ge.s32.totalorder %s1045_s11, 4   ;;  %s1240_s24 = smov %s945_s25 }
 0x2e5   : > { %s1241_s25 = smov %s949_s26  ;;  %s1242_s26 = smov %s1071_s14 }
 0x2e6   : > { %s1243_s27 = smov %s1045_s11  ;;  %20 = sbr.rel (!%p18_p8) target bundleno = 4 (0x4), region = 92 }
 0x2ed   :  { %626 = vsyncpa [#allocation3], 1 }
 0x2ee   :  { %628 = vsyncpa [#allocation3 + $0x1], 1 }
 0x2ef   :  { %629 = vsyncpa [#allocation5], 1 }

</bundles_post_ra>
